<compile_context>
chip_gen: v6e
topology: v6e:2x2x1
jax: 0.10.0
libtpu: 0.0.40
codegen_flags: <defaults>
</compile_context>

<pallas_src>
import jax
import jax.numpy as jnp
from jax.experimental import pallas as pl
from jax.experimental.pallas import tpu as pltpu

D_IN, D_H, D_OUT = 2, 3, 2
# Flat (in, out) row-major weight offsets inside the packed SMEM vector.
_W1_OFF = 0
_W2_OFF = _W1_OFF + D_IN * D_H          # 6
_W3_OFF = _W2_OFF + D_H * D_H           # 15
_N_W = _W3_OFF + D_H * D_OUT            # 21


def _pick_chunk(tbb):
    """Largest sublane-chunk (<=32) that divides the block's sublane extent."""
    for c in (32, 16, 8):
        if tbb % c == 0:
            return c
    return tbb


def mlp_kernel(w_ref, x_ref, o_ref):
    # w_ref: SMEM f32[21] packed weights; x_ref: VMEM (D_IN, tbb, 128);
    # o_ref: VMEM (D_OUT, tbb, 128). Batch is on the lane axis (dense).
    tbb = x_ref.shape[1]
    chunk = _pick_chunk(tbb)
    n_chunks = tbb // chunk

    # Hoist the 21 SMEM scalar loads out of the chunk loop.
    w = [w_ref[i] for i in range(_N_W)]

    def layer(inp, k, n, off):
        # out[c] = sigmoid(sum_j w[j, c] * inp[j]); scalar x vreg FMAs on VPU,
        # sigmoid on the EUP. k, n in {2, 3} -> fully static unroll.
        outs = []
        for c in range(n):
            acc = inp[0] * w[off + c]
            for j in range(1, k):
                acc = acc + inp[j] * w[off + j * n + c]
            outs.append(jax.nn.sigmoid(acc))
        return outs

    def body(ci, carry):
        r0 = pl.multiple_of(ci * chunk, chunk)
        xs = [x_ref[j, pl.ds(r0, chunk), :] for j in range(D_IN)]   # (chunk,128)
        h = layer(xs, D_IN, D_H, _W1_OFF)
        h = layer(h, D_H, D_H, _W2_OFF)
        o = layer(h, D_H, D_OUT, _W3_OFF)
        for c in range(D_OUT):
            o_ref[c, pl.ds(r0, chunk), :] = o[c].astype(o_ref.dtype)
        return carry

    jax.lax.fori_loop(0, n_chunks, body, 0)


def _round_up(n, m):
    return ((n + m - 1) // m) * m


def mlp_forward(x, w1, w2, w3, *, block_b=262144):
    """x: (B, 2) f32; w1:(2,3), w2:(3,3), w3:(3,2) already in (in, out) layout
    (PyTorch Linear stores (out, in) and computes x @ W.T)."""
    B, d_in = x.shape
    assert d_in == D_IN and w3.shape[1] == D_OUT
    d_out = D_OUT

    # One flat SMEM weight vector (row-major (in, out) for each layer).
    w_flat = jnp.concatenate(
        [w1.reshape(-1), w2.reshape(-1), w3.reshape(-1)]).astype(jnp.float32)

    # Lane-dense re-layout: batch on the 128-lane axis, features on the leading
    # axis. Pad only to the next multiple of 128 (<=127 rows); the
    # pad+transpose+reshape is wrapper-side layout plumbing that XLA fuses into
    # a single copy (fold into the producer in a larger model).
    B_pad = _round_up(B, 128)
    n_cols = B_pad // 128
    x_lanes = (
        jnp.pad(x.astype(jnp.float32), ((0, B_pad - B), (0, 0)))
        .T.reshape(d_in, n_cols, 128)
    )

    # Batch tile: block_b rows per grid step (multiple of 8 sublane-groups of
    # 128 lanes); partial tail block handled by the grid (row-independent math,
    # OOB writes discarded by Pallas).
    tbb_full = max(8, (block_b // 128) // 8 * 8)
    tbb = n_cols if n_cols <= tbb_full else tbb_full
    grid = (pl.cdiv(n_cols, tbb),)

    out = pl.pallas_call(
        mlp_kernel,
        out_shape=jax.ShapeDtypeStruct((d_out, n_cols, 128), jnp.float32),
        grid=grid,
        in_specs=[
            pl.BlockSpec(memory_space=pltpu.MemorySpace.SMEM),     # 21 weight scalars
            pl.BlockSpec((d_in, tbb, 128), lambda i: (0, i, 0)),   # lane-dense batch tile
        ],
        out_specs=pl.BlockSpec((d_out, tbb, 128), lambda i: (0, i, 0)),
        compiler_params=pltpu.CompilerParams(
            # Independent batch axis: shards across v7x's 2 TensorCores
            # (no-op on v5e/v6e).
            dimension_semantics=("parallel",),
        ),
        cost_estimate=pl.CostEstimate(
            flops=34 * B_pad,            # 9 + 15 + 10 mul/add per row
            transcendentals=8 * B_pad,   # 3 + 3 + 2 sigmoids per row
            bytes_accessed=16 * B_pad,   # 8 B in + 8 B out per row
        ),
    )(w_flat, x_lanes)

    return out.reshape(d_out, B_pad).T[:B]


def _init_linear_weight(key, out_features, in_features):
    # PyTorch nn.Linear default init: U(-1/sqrt(fan_in), 1/sqrt(fan_in)),
    # stored as (out, in). (No bias: the spec uses bias=False everywhere.)
    bound = 1.0 / jnp.sqrt(jnp.float32(in_features))
    return jax.random.uniform(
        key, (out_features, in_features), jnp.float32, minval=-bound, maxval=bound
    )


if __name__ == "__main__":
    key = jax.random.PRNGKey(0)
    kx, k1, k2, k3, kb = jax.random.split(key, 5)

    # Input: torch.rand(5, 2) * 5  ->  U[0, 5) of shape (5, 2).
    x = jax.random.uniform(kx, (5, 2), jnp.float32) * 5.0

    # Weights in PyTorch storage layout (out, in), transposed to (in, out).
    w1 = _init_linear_weight(k1, 3, 2).T  # (2, 3)
    w2 = _init_linear_weight(k2, 3, 3).T  # (3, 3)
    w3 = _init_linear_weight(k3, 2, 3).T  # (3, 2)

    def ref_fwd(xv):
        h = xv
        for w in (w1, w2, w3):
            h = jax.nn.sigmoid(h @ w)
        return h

    # Spec-sized check (5, 2).
    out = jax.block_until_ready(mlp_forward(x, w1, w2, w3))
    assert out.shape == (5, 2)
    assert jnp.allclose(out, ref_fwd(x), atol=1e-5, rtol=1e-5)

    # Secondary check: batch large enough to exercise multi-step grid, a
    # partial tail block, and the in-kernel chunk loop.
    xb = jax.random.uniform(kb, (9000, 2), jnp.float32) * 5.0
    outb = jax.block_until_ready(mlp_forward(xb, w1, w2, w3, block_b=8192))
    assert outb.shape == (9000, 2)
    assert jnp.allclose(outb, ref_fwd(xb), atol=1e-5, rtol=1e-5)

    print("KERNEL_OK")
</pallas_src>

<mosaic_0001>
module attributes {stable_mosaic.version = 11 : i64} {
  func.func @mlp_kernel(%arg0: i32, %arg1: memref<21xf32, #tpu.memory_space<smem>>, %arg2: memref<2x1x128xf32, #tpu.memory_space<vmem>>, %arg3: memref<2x1x128xf32, #tpu.memory_space<vmem>>) attributes {dimension_semantics = [#tpu.dimension_semantics<parallel>], iteration_bounds = array<i64: 1>, scalar_prefetch = 0 : i64, scratch_operands = 0 : i64, tpu.core_type = #tpu.core_type<tc>, window_params = [{transform_indices = @transform_0, window_bounds = array<i64: 21>}, {transform_indices = @transform_1, window_bounds = array<i64: 2, 1, 128>}, {transform_indices = @transform_2, window_bounds = array<i64: 2, 1, 128>}]} {
    %c0 = arith.constant 0 : index
    %0 = memref.load %arg1[%c0] : memref<21xf32, #tpu.memory_space<smem>>
    %c1 = arith.constant 1 : index
    %1 = memref.load %arg1[%c1] : memref<21xf32, #tpu.memory_space<smem>>
    %c2 = arith.constant 2 : index
    %2 = memref.load %arg1[%c2] : memref<21xf32, #tpu.memory_space<smem>>
    %c3 = arith.constant 3 : index
    %3 = memref.load %arg1[%c3] : memref<21xf32, #tpu.memory_space<smem>>
    %c4 = arith.constant 4 : index
    %4 = memref.load %arg1[%c4] : memref<21xf32, #tpu.memory_space<smem>>
    %c5 = arith.constant 5 : index
    %5 = memref.load %arg1[%c5] : memref<21xf32, #tpu.memory_space<smem>>
    %c6 = arith.constant 6 : index
    %6 = memref.load %arg1[%c6] : memref<21xf32, #tpu.memory_space<smem>>
    %c7 = arith.constant 7 : index
    %7 = memref.load %arg1[%c7] : memref<21xf32, #tpu.memory_space<smem>>
    %c8 = arith.constant 8 : index
    %8 = memref.load %arg1[%c8] : memref<21xf32, #tpu.memory_space<smem>>
    %c9 = arith.constant 9 : index
    %9 = memref.load %arg1[%c9] : memref<21xf32, #tpu.memory_space<smem>>
    %c10 = arith.constant 10 : index
    %10 = memref.load %arg1[%c10] : memref<21xf32, #tpu.memory_space<smem>>
    %c11 = arith.constant 11 : index
    %11 = memref.load %arg1[%c11] : memref<21xf32, #tpu.memory_space<smem>>
    %c12 = arith.constant 12 : index
    %12 = memref.load %arg1[%c12] : memref<21xf32, #tpu.memory_space<smem>>
    %c13 = arith.constant 13 : index
    %13 = memref.load %arg1[%c13] : memref<21xf32, #tpu.memory_space<smem>>
    %c14 = arith.constant 14 : index
    %14 = memref.load %arg1[%c14] : memref<21xf32, #tpu.memory_space<smem>>
    %c15 = arith.constant 15 : index
    %15 = memref.load %arg1[%c15] : memref<21xf32, #tpu.memory_space<smem>>
    %c16 = arith.constant 16 : index
    %16 = memref.load %arg1[%c16] : memref<21xf32, #tpu.memory_space<smem>>
    %c17 = arith.constant 17 : index
    %17 = memref.load %arg1[%c17] : memref<21xf32, #tpu.memory_space<smem>>
    %c18 = arith.constant 18 : index
    %18 = memref.load %arg1[%c18] : memref<21xf32, #tpu.memory_space<smem>>
    %c19 = arith.constant 19 : index
    %19 = memref.load %arg1[%c19] : memref<21xf32, #tpu.memory_space<smem>>
    %c20 = arith.constant 20 : index
    %20 = memref.load %arg1[%c20] : memref<21xf32, #tpu.memory_space<smem>>
    %c0_i32 = arith.constant 0 : i32
    %c1_i32 = arith.constant 1 : i32
    %21 = arith.muli %c0_i32, %c1_i32 : i32
    %22 = tpu.assume_multiple %21, 1 : i32
    %c0_0 = arith.constant 0 : index
    %23 = arith.index_cast %22 : i32 to index
    %c0_1 = arith.constant 0 : index
    %24 = vector.load %arg2[%c0_0, %23, %c0_1] : memref<2x1x128xf32, #tpu.memory_space<vmem>>, vector<1x1x128xf32>
    %25 = vector.shape_cast %24 : vector<1x1x128xf32> to vector<1x128xf32>
    %c1_2 = arith.constant 1 : index
    %26 = arith.index_cast %22 : i32 to index
    %c0_3 = arith.constant 0 : index
    %27 = vector.load %arg2[%c1_2, %26, %c0_3] : memref<2x1x128xf32, #tpu.memory_space<vmem>>, vector<1x1x128xf32>
    %28 = vector.shape_cast %27 : vector<1x1x128xf32> to vector<1x128xf32>
    %29 = vector.broadcast %0 : f32 to vector<1x128xf32>
    %30 = arith.mulf %25, %29 : vector<1x128xf32>
    %31 = vector.broadcast %3 : f32 to vector<1x128xf32>
    %32 = arith.mulf %28, %31 : vector<1x128xf32>
    %33 = arith.addf %30, %32 : vector<1x128xf32>
    %34 = arith.negf %33 : vector<1x128xf32>
    %35 = math.exp %34 : vector<1x128xf32>
    %cst = arith.constant 1.000000e+00 : f32
    %36 = vector.broadcast %cst : f32 to vector<1x128xf32>
    %37 = arith.addf %36, %35 : vector<1x128xf32>
    %38 = arith.divf %36, %37 : vector<1x128xf32>
    %39 = vector.broadcast %1 : f32 to vector<1x128xf32>
    %40 = arith.mulf %25, %39 : vector<1x128xf32>
    %41 = vector.broadcast %4 : f32 to vector<1x128xf32>
    %42 = arith.mulf %28, %41 : vector<1x128xf32>
    %43 = arith.addf %40, %42 : vector<1x128xf32>
    %44 = arith.negf %43 : vector<1x128xf32>
    %45 = math.exp %44 : vector<1x128xf32>
    %cst_4 = arith.constant 1.000000e+00 : f32
    %46 = vector.broadcast %cst_4 : f32 to vector<1x128xf32>
    %47 = arith.addf %46, %45 : vector<1x128xf32>
    %48 = arith.divf %46, %47 : vector<1x128xf32>
    %49 = vector.broadcast %2 : f32 to vector<1x128xf32>
    %50 = arith.mulf %25, %49 : vector<1x128xf32>
    %51 = vector.broadcast %5 : f32 to vector<1x128xf32>
    %52 = arith.mulf %28, %51 : vector<1x128xf32>
    %53 = arith.addf %50, %52 : vector<1x128xf32>
    %54 = arith.negf %53 : vector<1x128xf32>
    %55 = math.exp %54 : vector<1x128xf32>
    %cst_5 = arith.constant 1.000000e+00 : f32
    %56 = vector.broadcast %cst_5 : f32 to vector<1x128xf32>
    %57 = arith.addf %56, %55 : vector<1x128xf32>
    %58 = arith.divf %56, %57 : vector<1x128xf32>
    %59 = vector.broadcast %6 : f32 to vector<1x128xf32>
    %60 = arith.mulf %38, %59 : vector<1x128xf32>
    %61 = vector.broadcast %9 : f32 to vector<1x128xf32>
    %62 = arith.mulf %48, %61 : vector<1x128xf32>
    %63 = arith.addf %60, %62 : vector<1x128xf32>
    %64 = vector.broadcast %12 : f32 to vector<1x128xf32>
    %65 = arith.mulf %58, %64 : vector<1x128xf32>
    %66 = arith.addf %63, %65 : vector<1x128xf32>
    %67 = arith.negf %66 : vector<1x128xf32>
    %68 = math.exp %67 : vector<1x128xf32>
    %cst_6 = arith.constant 1.000000e+00 : f32
    %69 = vector.broadcast %cst_6 : f32 to vector<1x128xf32>
    %70 = arith.addf %69, %68 : vector<1x128xf32>
    %71 = arith.divf %69, %70 : vector<1x128xf32>
    %72 = vector.broadcast %7 : f32 to vector<1x128xf32>
    %73 = arith.mulf %38, %72 : vector<1x128xf32>
    %74 = vector.broadcast %10 : f32 to vector<1x128xf32>
    %75 = arith.mulf %48, %74 : vector<1x128xf32>
    %76 = arith.addf %73, %75 : vector<1x128xf32>
    %77 = vector.broadcast %13 : f32 to vector<1x128xf32>
    %78 = arith.mulf %58, %77 : vector<1x128xf32>
    %79 = arith.addf %76, %78 : vector<1x128xf32>
    %80 = arith.negf %79 : vector<1x128xf32>
    %81 = math.exp %80 : vector<1x128xf32>
    %cst_7 = arith.constant 1.000000e+00 : f32
    %82 = vector.broadcast %cst_7 : f32 to vector<1x128xf32>
    %83 = arith.addf %82, %81 : vector<1x128xf32>
    %84 = arith.divf %82, %83 : vector<1x128xf32>
    %85 = vector.broadcast %8 : f32 to vector<1x128xf32>
    %86 = arith.mulf %38, %85 : vector<1x128xf32>
    %87 = vector.broadcast %11 : f32 to vector<1x128xf32>
    %88 = arith.mulf %48, %87 : vector<1x128xf32>
    %89 = arith.addf %86, %88 : vector<1x128xf32>
    %90 = vector.broadcast %14 : f32 to vector<1x128xf32>
    %91 = arith.mulf %58, %90 : vector<1x128xf32>
    %92 = arith.addf %89, %91 : vector<1x128xf32>
    %93 = arith.negf %92 : vector<1x128xf32>
    %94 = math.exp %93 : vector<1x128xf32>
    %cst_8 = arith.constant 1.000000e+00 : f32
    %95 = vector.broadcast %cst_8 : f32 to vector<1x128xf32>
    %96 = arith.addf %95, %94 : vector<1x128xf32>
    %97 = arith.divf %95, %96 : vector<1x128xf32>
    %98 = vector.broadcast %15 : f32 to vector<1x128xf32>
    %99 = arith.mulf %71, %98 : vector<1x128xf32>
    %100 = vector.broadcast %17 : f32 to vector<1x128xf32>
    %101 = arith.mulf %84, %100 : vector<1x128xf32>
    %102 = arith.addf %99, %101 : vector<1x128xf32>
    %103 = vector.broadcast %19 : f32 to vector<1x128xf32>
    %104 = arith.mulf %97, %103 : vector<1x128xf32>
    %105 = arith.addf %102, %104 : vector<1x128xf32>
    %106 = arith.negf %105 : vector<1x128xf32>
    %107 = math.exp %106 : vector<1x128xf32>
    %cst_9 = arith.constant 1.000000e+00 : f32
    %108 = vector.broadcast %cst_9 : f32 to vector<1x128xf32>
    %109 = arith.addf %108, %107 : vector<1x128xf32>
    %110 = arith.divf %108, %109 : vector<1x128xf32>
    %111 = vector.broadcast %16 : f32 to vector<1x128xf32>
    %112 = arith.mulf %71, %111 : vector<1x128xf32>
    %113 = vector.broadcast %18 : f32 to vector<1x128xf32>
    %114 = arith.mulf %84, %113 : vector<1x128xf32>
    %115 = arith.addf %112, %114 : vector<1x128xf32>
    %116 = vector.broadcast %20 : f32 to vector<1x128xf32>
    %117 = arith.mulf %97, %116 : vector<1x128xf32>
    %118 = arith.addf %115, %117 : vector<1x128xf32>
    %119 = arith.negf %118 : vector<1x128xf32>
    %120 = math.exp %119 : vector<1x128xf32>
    %cst_10 = arith.constant 1.000000e+00 : f32
    %121 = vector.broadcast %cst_10 : f32 to vector<1x128xf32>
    %122 = arith.addf %121, %120 : vector<1x128xf32>
    %123 = arith.divf %121, %122 : vector<1x128xf32>
    %c0_11 = arith.constant 0 : index
    %124 = arith.index_cast %22 : i32 to index
    %c0_12 = arith.constant 0 : index
    %125 = vector.load %arg3[%c0_11, %124, %c0_12] : memref<2x1x128xf32, #tpu.memory_space<vmem>>, vector<1x1x128xf32>
    %126 = vector.shape_cast %125 : vector<1x1x128xf32> to vector<1x128xf32>
    %127 = vector.shape_cast %110 : vector<1x128xf32> to vector<1x1x128xf32>
    tpu.vector_store %arg3[%c0_11, %124, %c0_12], %127 {strides = array<i32>} : memref<2x1x128xf32, #tpu.memory_space<vmem>>, vector<1x1x128xf32>,
    %c1_13 = arith.constant 1 : index
    %128 = arith.index_cast %22 : i32 to index
    %c0_14 = arith.constant 0 : index
    %129 = vector.load %arg3[%c1_13, %128, %c0_14] : memref<2x1x128xf32, #tpu.memory_space<vmem>>, vector<1x1x128xf32>
    %130 = vector.shape_cast %129 : vector<1x1x128xf32> to vector<1x128xf32>
    %131 = vector.shape_cast %123 : vector<1x128xf32> to vector<1x1x128xf32>
    tpu.vector_store %arg3[%c1_13, %128, %c0_14], %131 {strides = array<i32>} : memref<2x1x128xf32, #tpu.memory_space<vmem>>, vector<1x1x128xf32>,
    %c1_i32_15 = arith.constant 1 : i32
    return
  }
  func.func @transform_0(%arg0: i32) -> i32 {
    %c0_i32 = arith.constant 0 : i32
    %c0_i32_0 = arith.constant 0 : i32
    return %c0_i32 : i32
  }
  func.func @transform_1(%arg0: i32) -> (i32, i32, i32) {
    %c0_i32 = arith.constant 0 : i32
    %c0_i32_0 = arith.constant 0 : i32
    %c0_i32_1 = arith.constant 0 : i32
    return %c0_i32, %arg0, %c0_i32_0 : i32, i32, i32
  }
  func.func @transform_2(%arg0: i32) -> (i32, i32, i32) {
    %c0_i32 = arith.constant 0 : i32
    %c0_i32_0 = arith.constant 0 : i32
    %c0_i32_1 = arith.constant 0 : i32
    return %c0_i32, %arg0, %c0_i32_0 : i32, i32, i32
  }
}

</mosaic_0001>

<bundles_post_ra>
// kernel: tpu_custom_call.1
= control target key start
LH: loop header
LB: loop body
LE: loop exit
PB: predicated region body
PF: predicated region fallthrough
CT: control target
= control target key end

     0   :  { %7 = vsyncpa [#allocation5], 0  ;;  %s342_s0 = inlined_call_operand.hbm [shape: f32[21], index: 0, kind: input, shape index: {}]   ;;  %s343_s1 = inlined_call_operand.hbm [shape: f32[2,1,128], index: 1, kind: input, shape index: {}]   ;;  %s344_s2 = inlined_call_operand.hbm [shape: f32[2,1,128], index: 2, kind: output, shape index: {}]  }
   0x1   :  { %8 = vsyncpa [#allocation3], 0 }
   0x2   :  { %9 = vsyncpa [#allocation4], 0  ;;  %s307_s9 = smov [#allocation2]   ;;  %s308_s12 = smov [#allocation6]  }
   0x3   :  { %17 = dma.hbm_to_smem %s342_s0, 16, %s307_s9, [#allocation5]  }
   0x4   :  { %s23_s13 = sshll.u32 %s308_s12, 4  ;;  %s24_s13 = int_to_ptr.vmem [resolvable:$true] %s23_s13 }
   0x5   :  { %s269_s14 = scalar_lea.vmem %s24_s13, 32  ;;  %p274_p1 = scmp.lt.s32.totalorder %s24_s13, %s24_s13 }
   0x6   :  { %p270_p0 = scmp.ne.s32.totalorder %s24_s13, %s269_s14  ;;  %p275_p2 = scmp.lt.s32.totalorder %s269_s14, %s269_s14 }
   0x8   :  { %p276_p3 = por %p275_p2, %p274_p1 }
   0xa   :  { %p277_p4 = pnand %p276_p3, %p270_p0 }
   0xc   :  { %280 = shalt.err (!%p277_p4)
}
   0xd   :  { %s309_s15 = smov 16   ;;  %s310_s16 = smov 1  }
   0xe   :  { %29 = dma.hbm_to_vmem [thread:$0]  %s343_s1, 32, %s24_s13, [#allocation3], %s309_s15, %s309_s15, %s310_s16  }
   0xf   :  { %301 = dma.done.wait [#allocation5], 16  }
  0x10   :  { %302 = vsyncadd [#allocation5], 4294967280 }
  0x11   :  { %303 = dma.done.wait [#allocation3], 32  }
  0x12   :  { %304 = vsyncadd [#allocation3], 4294967264 }
  0x13   :  { %36 = sfence }
  0x14   :  { %s37_s0 = sld [smem:[#allocation2]]  ;;  %v58_v0 = vld [vmem:[#allocation6] sm:$0x1]  ;;  %v61_v2 = vld [vmem:[#allocation6 + $0x1] sm:$0x1]  ;;  %s311_s10 = smov [#allocation7]  }
  0x15   :  { %s188_s19 = sld [smem:[#allocation2 + $0x1]]  ;;  %s173_s11 = sshll.u32 %s311_s10, 4  ;;  %s174_s11 = int_to_ptr.vmem [resolvable:$true] %s173_s11 }
  0x16   :  { %s189_s20 = sld [smem:[#allocation2 + $0x2]]  ;;  %s281_s12 = scalar_lea.vmem %s174_s11, 32 }
  0x17   :  { %s190_s21 = sld [smem:[#allocation2 + $0x3]]  ;;  %p282_p5 = scmp.ne.s32.totalorder %s174_s11, %s281_s12 }
  0x18   :  { %s191_s22 = sld [smem:[#allocation2 + $0x4]]  ;;  %p286_p6 = scmp.lt.s32.totalorder %s174_s11, %s174_s11 }
  0x19   :  { %s192_s23 = sld [smem:[#allocation2 + $0x5]]  ;;  %p287_p7 = scmp.lt.s32.totalorder %s281_s12, %s281_s12 }
  0x1a   :  { %v62_v1 = vstv %s37_s0  ;;  %s193_s1 = sld [smem:[#allocation2 + $0x6]] }
  0x1b   :  { %v73_v3 = vstv %s188_s19  ;;  %v63_v4 = vmul.f32 %v62_v1, %v58_v0  ;;  %s194_s24 = sld [smem:[#allocation2 + $0x7]]  ;;  %p288_p8 = por %p287_p7, %p286_p6 }
  0x1c   :  { %v84_v5 = vstv %s189_s20  ;;  %v74_v7 = vmul.f32 %v73_v3, %v58_v0  ;;  %s195_s25 = sld [smem:[#allocation2 + $0x8]] }
  0x1d   :  { %v64_v6 = vstv %s190_s21  ;;  %v85_v10 = vmul.f32 %v84_v5, %v58_v0  ;;  %s196_s26 = sld [smem:[#allocation2 + $0x9]]  ;;  %p289_p9 = pnand %p288_p8, %p282_p5 }
  0x1e   :  { %v65_v8 = vmul.f32 %v64_v6, %v61_v2  ;;  %v75_v9 = vstv %s191_s22  ;;  %s197_s27 = sld [smem:[#allocation2 + $0xa]] }
  0x1f   :  { %v76_v11 = vmul.f32 %v75_v9, %v61_v2  ;;  %v86_v12 = vstv %s192_s23  ;;  %s198_s28 = sld [smem:[#allocation2 + $0xb]] }
  0x20   :  { %v66_v13 = vadd.f32 %v65_v8, %v63_v4  ;;  %v87_v14 = vmul.f32 %v86_v12, %v61_v2  ;;  %s199_s29 = sld [smem:[#allocation2 + $0xc]]  ;;  %v95_v26 = vstv %s193_s1 }
  0x21   :  { %v77_v15 = vadd.f32 %v76_v11, %v74_v7  ;;  %s200_s30 = sld [smem:[#allocation2 + $0xd]]  ;;  %v109_v27 = vstv %s194_s24 }
  0x22   :  { %v208_v16 = vmul.f32 -1.442695, %v66_v13  ;;  %v88_v17 = vadd.f32 %v87_v14, %v85_v10  ;;  %s201_s3 = sld [smem:[#allocation2 + $0xe]]  ;;  %v123_v28 = vstv %s195_s25 }
  0x23   :  { %v209_v18 = vmul.f32 -1.442695, %v77_v15  ;;  %v97_v29 = vstv %s196_s26  ;;  %s202_s4 = sld [smem:[#allocation2 + $0xf]] }
  0x24   :  { %221 = vpow2.f32 %v208_v16  ;;  %v210_v19 = vmul.f32 -1.442695, %v88_v17  ;;  %v111_v30 = vstv %s197_s27  ;;  %s204_s5 = sld [smem:[#allocation2 + $0x11]] }
  0x25   :  { %223 = vpow2.f32 %v209_v18  ;;  %v125_v31 = vstv %s198_s28  ;;  %s206_s6 = sld [smem:[#allocation2 + $0x13]] }
  0x26   :  { %225 = vpow2.f32 %v210_v19  ;;  %v100_v33 = vstv %s199_s29  ;;  %s203_s7 = sld [smem:[#allocation2 + $0x10]] }
  0x27   :  { %v114_v34 = vstv %s200_s30  ;;  %s205_s8 = sld [smem:[#allocation2 + $0x12]] }
  0x28   :  { %v128_v35 = vstv %s201_s3  ;;  %s207_s9 = sld [smem:[#allocation2 + $0x14]] }
  0x29   :  { %v137_v62 = vstv %s202_s4 }
  0x2a   :  { %v139_v0 = vstv %s204_s5 }
  0x2b   :  { %v142_v3 = vstv %s206_s6 }
  0x2c   :  { %v151_v63 = vstv %s203_s7 }
  0x2d   :  { %v153_v1 = vstv %s205_s8 }
  0x2e   :  { %v156_v4 = vstv %s207_s9 }
  0x31   :  { %v222_v20 = vpop.eup %221 }
  0x32   :  { %v224_v21 = vpop.eup %223  ;;  %v70_v22 = vadd.f32 1.0, %v222_v20 }
  0x33   :  { %v226_v23 = vpop.eup %225  ;;  %v81_v24 = vadd.f32 1.0, %v224_v21 }
  0x34   :  { %227 = vrcp.f32 %v70_v22  ;;  %v92_v25 = vadd.f32 1.0, %v226_v23 }
  0x35   :  { %229 = vrcp.f32 %v81_v24 }
  0x36   :  { %231 = vrcp.f32 %v92_v25 }
  0x41   :  { %v228_v32 = vpop.eup %227 }
  0x42   :  { %v230_v36 = vpop.eup %229  ;;  %v96_v37 = vmul.f32 %v228_v32, %v95_v26  ;;  %v110_v38 = vmul.f32 %v228_v32, %v109_v27  ;;  %v124_v39 = vmul.f32 %v228_v32, %v123_v28 }
  0x43   :  { %v232_v40 = vpop.eup %231  ;;  %v98_v41 = vmul.f32 %v230_v36, %v97_v29  ;;  %v112_v42 = vmul.f32 %v230_v36, %v111_v30  ;;  %v126_v43 = vmul.f32 %v230_v36, %v125_v31 }
  0x44   :  { %v101_v44 = vmul.f32 %v232_v40, %v100_v33  ;;  %v115_v45 = vmul.f32 %v232_v40, %v114_v34  ;;  %v129_v46 = vmul.f32 %v232_v40, %v128_v35 }
  0x45   :  { %v99_v47 = vadd.f32 %v98_v41, %v96_v37  ;;  %v113_v48 = vadd.f32 %v112_v42, %v110_v38  ;;  %v127_v49 = vadd.f32 %v126_v43, %v124_v39 }
  0x47   :  { %v102_v50 = vadd.f32 %v101_v44, %v99_v47  ;;  %v116_v51 = vadd.f32 %v115_v45, %v113_v48  ;;  %v130_v52 = vadd.f32 %v129_v46, %v127_v49 }
  0x49   :  { %v211_v53 = vmul.f32 -1.442695, %v102_v50  ;;  %v212_v54 = vmul.f32 -1.442695, %v116_v51  ;;  %v213_v55 = vmul.f32 -1.442695, %v130_v52 }
  0x4b   :  { %233 = vpow2.f32 %v211_v53 }
  0x4c   :  { %235 = vpow2.f32 %v212_v54 }
  0x4d   :  { %237 = vpow2.f32 %v213_v55 }
  0x58   :  { %v234_v56 = vpop.eup %233 }
  0x59   :  { %v236_v57 = vpop.eup %235  ;;  %v106_v58 = vadd.f32 1.0, %v234_v56 }
  0x5a   :  { %v238_v59 = vpop.eup %237  ;;  %v120_v60 = vadd.f32 1.0, %v236_v57 }
  0x5b   :  { %239 = vrcp.f32 %v106_v58  ;;  %v134_v61 = vadd.f32 1.0, %v238_v59 }
  0x5c   :  { %241 = vrcp.f32 %v120_v60 }
  0x5d   :  { %243 = vrcp.f32 %v134_v61 }
  0x68   :  { %v240_v2 = vpop.eup %239 }
  0x69   :  { %v242_v5 = vpop.eup %241  ;;  %v138_v6 = vmul.f32 %v240_v2, %v137_v62  ;;  %v152_v7 = vmul.f32 %v240_v2, %v151_v63 }
  0x6a   :  { %v244_v8 = vpop.eup %243  ;;  %v140_v9 = vmul.f32 %v242_v5, %v139_v0  ;;  %v154_v10 = vmul.f32 %v242_v5, %v153_v1 }
  0x6b   :  { %v143_v11 = vmul.f32 %v244_v8, %v142_v3  ;;  %v157_v12 = vmul.f32 %v244_v8, %v156_v4 }
  0x6c   :  { %v141_v13 = vadd.f32 %v140_v9, %v138_v6  ;;  %v155_v14 = vadd.f32 %v154_v10, %v152_v7 }
  0x6e   :  { %v144_v15 = vadd.f32 %v143_v11, %v141_v13  ;;  %v158_v16 = vadd.f32 %v157_v12, %v155_v14 }
  0x70   :  { %v214_v17 = vmul.f32 -1.442695, %v144_v15  ;;  %v215_v18 = vmul.f32 -1.442695, %v158_v16 }
  0x72   :  { %245 = vpow2.f32 %v214_v17 }
  0x73   :  { %247 = vpow2.f32 %v215_v18 }
  0x7f   :  { %v246_v19 = vpop.eup %245 }
  0x80   :  { %v248_v20 = vpop.eup %247  ;;  %v148_v21 = vadd.f32 1.0, %v246_v19 }
  0x81   :  { %v162_v22 = vadd.f32 1.0, %v248_v20 }
  0x82   :  { %249 = vrcp.f32 %v148_v21 }
  0x83   :  { %251 = vrcp.f32 %v162_v22 }
  0x8f   :  { %v250_v23 = vpop.eup %249 }
  0x90   :  { %v252_v24 = vpop.eup %251  ;;  %165 = vst [vmem:[#allocation7] sm:$0x1] %v250_v23 }
  0x91   :  { %167 = vst [vmem:[#allocation7 + $0x1] sm:$0x1] %v252_v24 }
  0x92   :  { %292 = shalt.err (!%p289_p9)
}
  0x93   :  { %179 = dma.vmem_to_hbm [thread:$0]  %s174_s11, 32, %s344_s2, [#allocation4], %s309_s15, %s309_s15, %s310_s16  }
  0x94   :  { %305 = dma.done.wait [#allocation4], 32  }
  0x95   :  { %306 = vsyncadd [#allocation4], 4294967264 }
  0x96   :  { %183 = vsyncpa [#allocation3], 1 }
  0x97   :  { %184 = vsyncpa [#allocation4], 1 }
  0x98   :  { %185 = vsyncpa [#allocation5], 1 }

</bundles_post_ra>
